<compile_context>
chip_gen: v7x
topology: tpu7x:2x2x1
jax: 0.10.0
libtpu: 0.0.40
codegen_flags: <defaults>
</compile_context>

<pallas_src>
import math
from collections import OrderedDict

import numpy as np
import jax
import jax.numpy as jnp
from jax import lax
from jax.experimental import pallas as pl
from jax.experimental.pallas import tpu as pltpu


# -----------------------------------------------------------------------------
# Host-side, deterministic Clebsch-Gordan machinery (mirrors schnetpack buffers)
# -----------------------------------------------------------------------------
def _f(n):
    return math.factorial(int(n))


def _cg_complex(j1, m1, j2, m2, j3, m3):
    """<j1 m1 j2 m2 | j3 m3> via the Racah formula (integer l only)."""
    if m3 != m1 + m2:
        return 0.0
    if not (abs(j1 - j2) <= j3 <= j1 + j2):
        return 0.0
    if abs(m1) > j1 or abs(m2) > j2 or abs(m3) > j3:
        return 0.0
    pref = math.sqrt(
        (2 * j3 + 1)
        * _f(j1 + j2 - j3) * _f(j1 - j2 + j3) * _f(-j1 + j2 + j3)
        / _f(j1 + j2 + j3 + 1)
    ) * math.sqrt(
        _f(j1 + m1) * _f(j1 - m1) * _f(j2 + m2) * _f(j2 - m2)
        * _f(j3 + m3) * _f(j3 - m3)
    )
    kmin = max(0, j2 - j3 - m1, j1 - j3 + m2)
    kmax = min(j1 + j2 - j3, j1 - m1, j2 + m2)
    s = 0.0
    for k in range(kmin, kmax + 1):
        s += (-1.0) ** k / (
            _f(k) * _f(j1 + j2 - j3 - k) * _f(j1 - m1 - k)
            * _f(j2 + m2 - k) * _f(j3 - j2 + m1 + k) * _f(j3 - j1 - m2 + k)
        )
    return pref * s


def sh_indices(lmax):
    lidx, midx = [], []
    for l in range(lmax + 1):
        for m in range(-l, l + 1):
            lidx.append(l)
            midx.append(m)
    return np.array(lidx), np.array(midx)


def generate_sh_to_rsh(lmax):
    """Unitary matrix U[(l,m)_real, (l,m')_complex]: complex SH -> real SH."""
    lidx, midx = sh_indices(lmax)
    n = (lmax + 1) ** 2
    U = np.zeros((n, n), dtype=np.complex128)
    for a in range(n):
        for b in range(n):
            if lidx[a] != lidx[b]:
                continue
            m1, m2 = int(midx[a]), int(midx[b])
            if m1 == 0 and m2 == 0:
                U[a, b] = 1.0
            elif m1 > 0 and m2 == m1:
                U[a, b] = (-1.0) ** abs(m1) / math.sqrt(2)
            elif m1 > 0 and m2 == -m1:
                U[a, b] = 1.0 / math.sqrt(2)
            elif m1 < 0 and m2 == -m1:
                U[a, b] = -1.0j * (-1.0) ** abs(m1) / math.sqrt(2)
            elif m1 < 0 and m2 == m1:
                U[a, b] = 1.0j / math.sqrt(2)
    return U


def generate_clebsch_gordan(lmax):
    lidx, midx = sh_indices(lmax)
    n = (lmax + 1) ** 2
    cg = np.zeros((n, n, n), dtype=np.float64)
    for c1 in range(n):
        for c2 in range(n):
            for c3 in range(n):
                cg[c1, c2, c3] = _cg_complex(
                    lidx[c1], midx[c1], lidx[c2], midx[c2], lidx[c3], midx[c3]
                )
    return cg


def generate_clebsch_gordan_rsh(lmax, parity_invariance=True):
    lidx, _ = sh_indices(lmax)
    cg = generate_clebsch_gordan(lmax).astype(np.complex128)
    U = generate_sh_to_rsh(lmax)
    cg_rsh = np.einsum("ijk,mi,nj,ok->mno", cg, U, U, U.conj())
    if parity_invariance:
        parity = (-1.0) ** lidx
        pmask = parity[:, None, None] * parity[None, :, None] == parity[None, None, :]
        cg_rsh = cg_rsh * pmask
    else:
        lsum = lidx[:, None, None] + lidx[None, :, None] - lidx[None, None, :]
        cg_rsh = cg_rsh * (1.0j ** lsum)
    return np.real(cg_rsh)


def sparsify_clebsch_gordon(cg, tol=1e-7):
    # row-major lexicographic order, same as torch.nonzero
    # TODO(synk): torch uses strict !=0; a tiny tolerance is used here to drop
    # float cancellation noise from the complex->real transform. Validate the
    # resulting (idx, cg) set against the torch buffers for a given lmax.
    idx = np.argwhere(np.abs(cg) > tol)
    idx_in_1, idx_in_2, idx_out = idx[:, 0], idx[:, 1], idx[:, 2]
    cg_sparse = cg[idx_in_1, idx_in_2, idx_out].astype(np.float32)
    return cg_sparse, idx_in_1, idx_in_2, idx_out


def _group_terms(idx_in_1, idx_in_2, idx_out, cg_sparse):
    """Group sparse CG terms by (i1, i2) pair (shared product) and, within a
    pair, by |cg| (shared scaling). Returns:
        [((i1, i2), [(|cg|, [(idx_out, sign), ...]), ...]), ...]
    """
    pairs = OrderedDict()
    for i1, i2, io, c in zip(idx_in_1, idx_in_2, idx_out, cg_sparse):
        c32 = float(np.float32(c))
        key = (int(i1), int(i2))
        mag = np.float32(abs(c32))
        sign = 1 if c32 >= 0.0 else -1
        pairs.setdefault(key, OrderedDict()).setdefault(mag, []).append((int(io), sign))
    out = []
    for key, mags in pairs.items():
        out.append((key, [(float(m), list(outs)) for m, outs in mags.items()]))
    return out


# -----------------------------------------------------------------------------
# Pallas kernel
# -----------------------------------------------------------------------------
def _make_so3_tp_kernel(pair_terms, S, Fp, ta, rows_per_chunk, unroll):
    """Kernel over a [ta, S*Fp] lane-dense tile; loops over 8-sublane row chunks."""
    n_chunks = ta // rows_per_chunk

    def kernel(x1_ref, x2_ref, y_ref):
        def chunk_body(c, carry):
            r = pl.multiple_of(c * rows_per_chunk, rows_per_chunk)
            rows = pl.ds(r, rows_per_chunk)

            # Each (l,m) channel is a 128-aligned static lane slice -> one
            # [rows_per_chunk, Fp] whole-vreg slab per channel, loaded once.
            x1s = [x1_ref[rows, s * Fp:(s + 1) * Fp] for s in range(S)]
            x2s = [x2_ref[rows, s * Fp:(s + 1) * Fp] for s in range(S)]

            accs = [None] * S
            for (i1, i2), mag_groups in pair_terms:
                p = x1s[i1] * x2s[i2]  # shared product across all terms of this pair
                for mag, outs in mag_groups:
                    scaled = p if mag == 1.0 else p * mag  # shared |cg| scaling
                    for io, sign in outs:
                        if accs[io] is None:
                            accs[io] = scaled if sign > 0 else -scaled
                        elif sign > 0:
                            accs[io] = accs[io] + scaled
                        else:
                            accs[io] = accs[io] - scaled

            for s in range(S):
                v = accs[s]
                if v is None:  # defensive: every (l,m) output has >=1 CG term
                    v = jnp.zeros((rows_per_chunk, Fp), y_ref.dtype)
                y_ref[rows, s * Fp:(s + 1) * Fp] = v.astype(y_ref.dtype)
            return carry

        lax.fori_loop(0, n_chunks, chunk_body, 0, unroll=unroll)

    return kernel


def _cdiv(a, b):
    return -(-a // b)


def _round_up(n, m):
    return _cdiv(n, m) * m


def _vmem_ceiling_bytes():
    """Physical VMEM minus headroom for compiler-internal scratch."""
    cap = None
    try:
        info = pltpu.get_tpu_info()
        cap = getattr(info, "vmem_capacity_bytes", None)
    except Exception:
        cap = None
    if cap is None:
        cap = 64 << 20  # conservative: v7x per-TC physical VMEM
    return (int(cap) * 3) // 4


def so3_tensor_product(x1, x2, cg_sparse, idx_in_1, idx_in_2, idx_out,
                       *, block_atoms=512, input_buffer_count=None):
    """x1, x2: [n_atoms, (lmax+1)^2, n_features] float32 (same as PyTorch)."""
    A, S, F = x1.shape
    assert x2.shape == (A, S, F)
    itemsize = jnp.dtype(x1.dtype).itemsize

    # Pad F to a multiple of 128 so every (l,m) channel is a whole-vreg,
    # 128-aligned lane slice (padded features multiply to zero; sliced off).
    Fp = _round_up(F, 128)
    if Fp != F:
        pad = [(0, 0), (0, 0), (0, Fp - F)]
        x1p = jnp.pad(x1, pad)
        x2p = jnp.pad(x2, pad)
    else:
        x1p, x2p = x1, x2

    # Free, contiguous reshape to a lane-dense [A, S*Fp] slab (no HBM transpose).
    x1f = x1p.reshape(A, S * Fp)
    x2f = x2p.reshape(A, S * Fp)

    vmem_ceiling = _vmem_ceiling_bytes()

    # ---- Atom tile selection -------------------------------------------------
    if A >= 8:
        ta = max(8, (min(block_atoms, A) // 8) * 8)
        # Guarantee >=2 (prefer >=4) grid steps so the "parallel" axis actually
        # shards across v7x's two TensorCores. No-op on v5e/v6e (1 TC).
        if A >= 16:
            target_steps = 4 if A >= 64 else 2
            ta = min(ta, _round_up(_cdiv(A, target_steps), 8))
        ta = max(8, ta)
        rows_per_chunk = 8
    else:
        ta = A
        rows_per_chunk = A

    def _tile_bytes(t):
        return t * S * Fp * itemsize

    # Shrink the tile if the 3-operand x double-buffered footprint would not
    # fit comfortably in VMEM (matters for large F / lmax, and on v7x's 64 MiB).
    while ta > 8 and 3 * 2 * _tile_bytes(ta) > vmem_ceiling:
        ta = max(8, ((ta // 2) // 8) * 8)

    grid = (pl.cdiv(A, ta),)

    # ---- Term grouping & vreg-pressure-gated unroll ---------------------------
    pair_terms = _group_terms(idx_in_1, idx_in_2, idx_out, cg_sparse)

    fp_vregs = max(1, Fp // 128)
    live_vregs = (3 * S + 2) * fp_vregs  # 2S inputs + S accumulators + temps
    unroll = 2 if (2 * live_vregs <= 56 and (ta // rows_per_chunk) > 1) else 1

    kernel = _make_so3_tp_kernel(pair_terms, S, Fp, ta, rows_per_chunk, unroll)

    # ---- VMEM limit: explicit and early, never the full physical capacity -----
    est_vmem = 3 * 2 * _tile_bytes(ta)
    vmem_limit = None
    if est_vmem > (8 << 20):  # v5e's scoped default is only 16 MiB -> be explicit early
        vmem_limit = int(min(2 * est_vmem, vmem_ceiling))

    # ---- Cost estimate (lets XLA schedule neighbors around the custom call) ---
    n_pair_muls = len(pair_terms)
    n_scale_muls = sum(1 for _, mg in pair_terms for mag, _ in mg if mag != 1.0)
    n_accum = sum(len(outs) for _, mg in pair_terms for _, outs in mg)
    cost = pl.CostEstimate(
        flops=int(A) * int(Fp) * (n_pair_muls + n_scale_muls + n_accum),
        transcendentals=0,
        bytes_accessed=3 * int(A) * int(S) * int(Fp) * itemsize,
    )

    # ---- BlockSpecs ------------------------------------------------------------
    def _in_spec():
        if input_buffer_count is not None and input_buffer_count != 2:
            # Only deepen input pipelining when xprof shows exposed DMA; each
            # extra buffer is another tile per operand against VMEM.
            return pl.BlockSpec((ta, S * Fp), lambda i: (i, 0),
                                pipeline_mode=pl.Buffered(input_buffer_count))
        return pl.BlockSpec((ta, S * Fp), lambda i: (i, 0))

    yf = pl.pallas_call(
        kernel,
        out_shape=jax.ShapeDtypeStruct((A, S * Fp), x1.dtype),
        grid=grid,
        in_specs=[_in_spec(), _in_spec()],
        out_specs=pl.BlockSpec((ta, S * Fp), lambda i: (i, 0)),
        compiler_params=pltpu.CompilerParams(
            dimension_semantics=("parallel",),
            vmem_limit_bytes=vmem_limit,
        ),
        cost_estimate=cost,
    )(x1f, x2f)

    y = yf.reshape(A, S, Fp)
    if Fp != F:
        y = y[:, :, :F]
    return y


# -----------------------------------------------------------------------------
def _reference(x1, x2, cg_sparse, idx1, idx2, idxo, S):
    """Pure-JAX reference mirroring the PyTorch forward exactly."""
    A, _, F = x1.shape
    x1g = x1[:, idx1, :]
    x2g = x2[:, idx2, :]
    terms = x1g * x2g * jnp.asarray(cg_sparse)[None, :, None]
    return jnp.zeros((A, S, F), jnp.float32).at[:, idxo, :].add(terms)


if __name__ == "__main__":
    lmax = 2
    S = (lmax + 1) ** 2  # 9

    cg_dense = generate_clebsch_gordan_rsh(lmax).astype(np.float32)
    cg_sparse, idx1, idx2, idxo = sparsify_clebsch_gordon(cg_dense)

    key = jax.random.PRNGKey(0)

    # Case 1: lane-aligned features (F multiple of 128), multi-step grid.
    n_atoms, n_features = 16, 128
    k1, k2, key = jax.random.split(key, 3)
    x1 = jax.random.normal(k1, (n_atoms, S, n_features), dtype=jnp.float32)
    x2 = jax.random.normal(k2, (n_atoms, S, n_features), dtype=jnp.float32)
    y = jax.block_until_ready(so3_tensor_product(x1, x2, cg_sparse, idx1, idx2, idxo))
    y_ref = _reference(x1, x2, cg_sparse, idx1, idx2, idxo, S)
    assert y.shape == (n_atoms, S, n_features) and y.dtype == jnp.float32
    np.testing.assert_allclose(np.asarray(y), np.asarray(y_ref), rtol=1e-5, atol=1e-5)

    # Case 2: non-128 feature width (exercises the pad/slice path) + ragged tail.
    n_atoms2, n_features2 = 12, 32
    k3, k4, key = jax.random.split(key, 3)
    x1b = jax.random.normal(k3, (n_atoms2, S, n_features2), dtype=jnp.float32)
    x2b = jax.random.normal(k4, (n_atoms2, S, n_features2), dtype=jnp.float32)
    yb = jax.block_until_ready(so3_tensor_product(x1b, x2b, cg_sparse, idx1, idx2, idxo))
    yb_ref = _reference(x1b, x2b, cg_sparse, idx1, idx2, idxo, S)
    assert yb.shape == (n_atoms2, S, n_features2) and yb.dtype == jnp.float32
    np.testing.assert_allclose(np.asarray(yb), np.asarray(yb_ref), rtol=1e-5, atol=1e-5)

    print("KERNEL_OK")
</pallas_src>

<mosaic_0001>
module attributes {stable_mosaic.version = 11 : i64} {
  func.func @kernel(%arg0: i32, %arg1: memref<8x1152xf32, #tpu.memory_space<vmem>>, %arg2: memref<8x1152xf32, #tpu.memory_space<vmem>>, %arg3: memref<8x1152xf32, #tpu.memory_space<vmem>>) attributes {dimension_semantics = [#tpu.dimension_semantics<parallel>], iteration_bounds = array<i64: 2>, scalar_prefetch = 0 : i64, scratch_operands = 0 : i64, tpu.core_type = #tpu.core_type<tc>, window_params = [{transform_indices = @transform_0, window_bounds = array<i64: 8, 1152>}, {transform_indices = @transform_1, window_bounds = array<i64: 8, 1152>}, {transform_indices = @transform_2, window_bounds = array<i64: 8, 1152>}]} {
    %c0_i32 = arith.constant 0 : i32
    %c8_i32 = arith.constant 8 : i32
    %0 = arith.muli %c0_i32, %c8_i32 : i32
    %1 = tpu.assume_multiple %0, 8 : i32
    %2 = arith.index_cast %1 : i32 to index
    %c0 = arith.constant 0 : index
    %3 = vector.load %arg1[%2, %c0] : memref<8x1152xf32, #tpu.memory_space<vmem>>, vector<8x128xf32>
    %4 = arith.index_cast %1 : i32 to index
    %c128 = arith.constant 128 : index
    %5 = vector.load %arg1[%4, %c128] : memref<8x1152xf32, #tpu.memory_space<vmem>>, vector<8x128xf32>
    %6 = arith.index_cast %1 : i32 to index
    %c256 = arith.constant 256 : index
    %7 = vector.load %arg1[%6, %c256] : memref<8x1152xf32, #tpu.memory_space<vmem>>, vector<8x128xf32>
    %8 = arith.index_cast %1 : i32 to index
    %c384 = arith.constant 384 : index
    %9 = vector.load %arg1[%8, %c384] : memref<8x1152xf32, #tpu.memory_space<vmem>>, vector<8x128xf32>
    %10 = arith.index_cast %1 : i32 to index
    %c512 = arith.constant 512 : index
    %11 = vector.load %arg1[%10, %c512] : memref<8x1152xf32, #tpu.memory_space<vmem>>, vector<8x128xf32>
    %12 = arith.index_cast %1 : i32 to index
    %c640 = arith.constant 640 : index
    %13 = vector.load %arg1[%12, %c640] : memref<8x1152xf32, #tpu.memory_space<vmem>>, vector<8x128xf32>
    %14 = arith.index_cast %1 : i32 to index
    %c768 = arith.constant 768 : index
    %15 = vector.load %arg1[%14, %c768] : memref<8x1152xf32, #tpu.memory_space<vmem>>, vector<8x128xf32>
    %16 = arith.index_cast %1 : i32 to index
    %c896 = arith.constant 896 : index
    %17 = vector.load %arg1[%16, %c896] : memref<8x1152xf32, #tpu.memory_space<vmem>>, vector<8x128xf32>
    %18 = arith.index_cast %1 : i32 to index
    %c1024 = arith.constant 1024 : index
    %19 = vector.load %arg1[%18, %c1024] : memref<8x1152xf32, #tpu.memory_space<vmem>>, vector<8x128xf32>
    %20 = arith.index_cast %1 : i32 to index
    %c0_0 = arith.constant 0 : index
    %21 = vector.load %arg2[%20, %c0_0] : memref<8x1152xf32, #tpu.memory_space<vmem>>, vector<8x128xf32>
    %22 = arith.index_cast %1 : i32 to index
    %c128_1 = arith.constant 128 : index
    %23 = vector.load %arg2[%22, %c128_1] : memref<8x1152xf32, #tpu.memory_space<vmem>>, vector<8x128xf32>
    %24 = arith.index_cast %1 : i32 to index
    %c256_2 = arith.constant 256 : index
    %25 = vector.load %arg2[%24, %c256_2] : memref<8x1152xf32, #tpu.memory_space<vmem>>, vector<8x128xf32>
    %26 = arith.index_cast %1 : i32 to index
    %c384_3 = arith.constant 384 : index
    %27 = vector.load %arg2[%26, %c384_3] : memref<8x1152xf32, #tpu.memory_space<vmem>>, vector<8x128xf32>
    %28 = arith.index_cast %1 : i32 to index
    %c512_4 = arith.constant 512 : index
    %29 = vector.load %arg2[%28, %c512_4] : memref<8x1152xf32, #tpu.memory_space<vmem>>, vector<8x128xf32>
    %30 = arith.index_cast %1 : i32 to index
    %c640_5 = arith.constant 640 : index
    %31 = vector.load %arg2[%30, %c640_5] : memref<8x1152xf32, #tpu.memory_space<vmem>>, vector<8x128xf32>
    %32 = arith.index_cast %1 : i32 to index
    %c768_6 = arith.constant 768 : index
    %33 = vector.load %arg2[%32, %c768_6] : memref<8x1152xf32, #tpu.memory_space<vmem>>, vector<8x128xf32>
    %34 = arith.index_cast %1 : i32 to index
    %c896_7 = arith.constant 896 : index
    %35 = vector.load %arg2[%34, %c896_7] : memref<8x1152xf32, #tpu.memory_space<vmem>>, vector<8x128xf32>
    %36 = arith.index_cast %1 : i32 to index
    %c1024_8 = arith.constant 1024 : index
    %37 = vector.load %arg2[%36, %c1024_8] : memref<8x1152xf32, #tpu.memory_space<vmem>>, vector<8x128xf32>
    %38 = arith.mulf %3, %21 : vector<8x128xf32>
    %39 = arith.mulf %3, %23 : vector<8x128xf32>
    %40 = arith.mulf %3, %25 : vector<8x128xf32>
    %41 = arith.mulf %3, %27 : vector<8x128xf32>
    %42 = arith.mulf %3, %29 : vector<8x128xf32>
    %43 = arith.mulf %3, %31 : vector<8x128xf32>
    %44 = arith.mulf %3, %33 : vector<8x128xf32>
    %45 = arith.mulf %3, %35 : vector<8x128xf32>
    %46 = arith.mulf %3, %37 : vector<8x128xf32>
    %47 = arith.mulf %5, %21 : vector<8x128xf32>
    %48 = arith.addf %39, %47 : vector<8x128xf32>
    %49 = arith.mulf %5, %23 : vector<8x128xf32>
    %cst = arith.constant 0.577350259 : f32
    %50 = vector.broadcast %cst : f32 to vector<8x128xf32>
    %51 = arith.mulf %49, %50 : vector<8x128xf32>
    %52 = arith.subf %38, %51 : vector<8x128xf32>
    %cst_9 = arith.constant 0.408248305 : f32
    %53 = vector.broadcast %cst_9 : f32 to vector<8x128xf32>
    %54 = arith.mulf %49, %53 : vector<8x128xf32>
    %55 = arith.subf %44, %54 : vector<8x128xf32>
    %cst_10 = arith.constant 0.707106769 : f32
    %56 = vector.broadcast %cst_10 : f32 to vector<8x128xf32>
    %57 = arith.mulf %49, %56 : vector<8x128xf32>
    %58 = arith.subf %46, %57 : vector<8x128xf32>
    %59 = arith.mulf %5, %25 : vector<8x128xf32>
    %cst_11 = arith.constant 0.707106769 : f32
    %60 = vector.broadcast %cst_11 : f32 to vector<8x128xf32>
    %61 = arith.mulf %59, %60 : vector<8x128xf32>
    %62 = arith.addf %43, %61 : vector<8x128xf32>
    %63 = arith.mulf %5, %27 : vector<8x128xf32>
    %cst_12 = arith.constant 0.707106769 : f32
    %64 = vector.broadcast %cst_12 : f32 to vector<8x128xf32>
    %65 = arith.mulf %63, %64 : vector<8x128xf32>
    %66 = arith.addf %42, %65 : vector<8x128xf32>
    %67 = arith.mulf %5, %29 : vector<8x128xf32>
    %cst_13 = arith.constant 0.547722578 : f32
    %68 = vector.broadcast %cst_13 : f32 to vector<8x128xf32>
    %69 = arith.mulf %67, %68 : vector<8x128xf32>
    %70 = arith.subf %41, %69 : vector<8x128xf32>
    %71 = arith.mulf %5, %31 : vector<8x128xf32>
    %cst_14 = arith.constant 0.547722578 : f32
    %72 = vector.broadcast %cst_14 : f32 to vector<8x128xf32>
    %73 = arith.mulf %71, %72 : vector<8x128xf32>
    %74 = arith.subf %40, %73 : vector<8x128xf32>
    %75 = arith.mulf %5, %33 : vector<8x128xf32>
    %cst_15 = arith.constant 0.316227764 : f32
    %76 = vector.broadcast %cst_15 : f32 to vector<8x128xf32>
    %77 = arith.mulf %75, %76 : vector<8x128xf32>
    %78 = arith.addf %48, %77 : vector<8x128xf32>
    %79 = arith.mulf %5, %37 : vector<8x128xf32>
    %cst_16 = arith.constant 0.547722578 : f32
    %80 = vector.broadcast %cst_16 : f32 to vector<8x128xf32>
    %81 = arith.mulf %79, %80 : vector<8x128xf32>
    %82 = arith.addf %78, %81 : vector<8x128xf32>
    %83 = arith.mulf %7, %21 : vector<8x128xf32>
    %84 = arith.addf %74, %83 : vector<8x128xf32>
    %85 = arith.mulf %7, %23 : vector<8x128xf32>
    %cst_17 = arith.constant 0.707106769 : f32
    %86 = vector.broadcast %cst_17 : f32 to vector<8x128xf32>
    %87 = arith.mulf %85, %86 : vector<8x128xf32>
    %88 = arith.addf %62, %87 : vector<8x128xf32>
    %89 = arith.mulf %7, %25 : vector<8x128xf32>
    %cst_18 = arith.constant 0.577350259 : f32
    %90 = vector.broadcast %cst_18 : f32 to vector<8x128xf32>
    %91 = arith.mulf %89, %90 : vector<8x128xf32>
    %92 = arith.subf %52, %91 : vector<8x128xf32>
    %cst_19 = arith.constant 0.816496611 : f32
    %93 = vector.broadcast %cst_19 : f32 to vector<8x128xf32>
    %94 = arith.mulf %89, %93 : vector<8x128xf32>
    %95 = arith.addf %55, %94 : vector<8x128xf32>
    %96 = arith.mulf %7, %27 : vector<8x128xf32>
    %cst_20 = arith.constant 0.707106769 : f32
    %97 = vector.broadcast %cst_20 : f32 to vector<8x128xf32>
    %98 = arith.mulf %96, %97 : vector<8x128xf32>
    %99 = arith.addf %45, %98 : vector<8x128xf32>
    %100 = arith.mulf %7, %31 : vector<8x128xf32>
    %cst_21 = arith.constant 0.547722578 : f32
    %101 = vector.broadcast %cst_21 : f32 to vector<8x128xf32>
    %102 = arith.mulf %100, %101 : vector<8x128xf32>
    %103 = arith.subf %82, %102 : vector<8x128xf32>
    %104 = arith.mulf %7, %33 : vector<8x128xf32>
    %cst_22 = arith.constant 0.632455527 : f32
    %105 = vector.broadcast %cst_22 : f32 to vector<8x128xf32>
    %106 = arith.mulf %104, %105 : vector<8x128xf32>
    %107 = arith.subf %84, %106 : vector<8x128xf32>
    %108 = arith.mulf %7, %35 : vector<8x128xf32>
    %cst_23 = arith.constant 0.547722578 : f32
    %109 = vector.broadcast %cst_23 : f32 to vector<8x128xf32>
    %110 = arith.mulf %108, %109 : vector<8x128xf32>
    %111 = arith.subf %70, %110 : vector<8x128xf32>
    %112 = arith.mulf %9, %21 : vector<8x128xf32>
    %113 = arith.addf %111, %112 : vector<8x128xf32>
    %114 = arith.mulf %9, %23 : vector<8x128xf32>
    %cst_24 = arith.constant 0.707106769 : f32
    %115 = vector.broadcast %cst_24 : f32 to vector<8x128xf32>
    %116 = arith.mulf %114, %115 : vector<8x128xf32>
    %117 = arith.addf %66, %116 : vector<8x128xf32>
    %118 = arith.mulf %9, %25 : vector<8x128xf32>
    %cst_25 = arith.constant 0.707106769 : f32
    %119 = vector.broadcast %cst_25 : f32 to vector<8x128xf32>
    %120 = arith.mulf %118, %119 : vector<8x128xf32>
    %121 = arith.addf %99, %120 : vector<8x128xf32>
    %122 = arith.mulf %9, %27 : vector<8x128xf32>
    %cst_26 = arith.constant 0.577350259 : f32
    %123 = vector.broadcast %cst_26 : f32 to vector<8x128xf32>
    %124 = arith.mulf %122, %123 : vector<8x128xf32>
    %125 = arith.subf %92, %124 : vector<8x128xf32>
    %cst_27 = arith.constant 0.408248305 : f32
    %126 = vector.broadcast %cst_27 : f32 to vector<8x128xf32>
    %127 = arith.mulf %122, %126 : vector<8x128xf32>
    %128 = arith.subf %95, %127 : vector<8x128xf32>
    %cst_28 = arith.constant 0.707106769 : f32
    %129 = vector.broadcast %cst_28 : f32 to vector<8x128xf32>
    %130 = arith.mulf %122, %129 : vector<8x128xf32>
    %131 = arith.addf %58, %130 : vector<8x128xf32>
    %132 = arith.mulf %9, %29 : vector<8x128xf32>
    %cst_29 = arith.constant 0.547722578 : f32
    %133 = vector.broadcast %cst_29 : f32 to vector<8x128xf32>
    %134 = arith.mulf %132, %133 : vector<8x128xf32>
    %135 = arith.subf %103, %134 : vector<8x128xf32>
    %136 = arith.mulf %9, %33 : vector<8x128xf32>
    %cst_30 = arith.constant 0.316227764 : f32
    %137 = vector.broadcast %cst_30 : f32 to vector<8x128xf32>
    %138 = arith.mulf %136, %137 : vector<8x128xf32>
    %139 = arith.addf %113, %138 : vector<8x128xf32>
    %140 = arith.mulf %9, %35 : vector<8x128xf32>
    %cst_31 = arith.constant 0.547722578 : f32
    %141 = vector.broadcast %cst_31 : f32 to vector<8x128xf32>
    %142 = arith.mulf %140, %141 : vector<8x128xf32>
    %143 = arith.subf %107, %142 : vector<8x128xf32>
    %144 = arith.mulf %9, %37 : vector<8x128xf32>
    %cst_32 = arith.constant 0.547722578 : f32
    %145 = vector.broadcast %cst_32 : f32 to vector<8x128xf32>
    %146 = arith.mulf %144, %145 : vector<8x128xf32>
    %147 = arith.subf %139, %146 : vector<8x128xf32>
    %148 = arith.mulf %11, %21 : vector<8x128xf32>
    %149 = arith.addf %117, %148 : vector<8x128xf32>
    %150 = arith.mulf %11, %23 : vector<8x128xf32>
    %cst_33 = arith.constant 0.547722578 : f32
    %151 = vector.broadcast %cst_33 : f32 to vector<8x128xf32>
    %152 = arith.mulf %150, %151 : vector<8x128xf32>
    %153 = arith.subf %147, %152 : vector<8x128xf32>
    %154 = arith.mulf %11, %27 : vector<8x128xf32>
    %cst_34 = arith.constant 0.547722578 : f32
    %155 = vector.broadcast %cst_34 : f32 to vector<8x128xf32>
    %156 = arith.mulf %154, %155 : vector<8x128xf32>
    %157 = arith.subf %135, %156 : vector<8x128xf32>
    %158 = arith.mulf %11, %29 : vector<8x128xf32>
    %cst_35 = arith.constant 0.44721359 : f32
    %159 = vector.broadcast %cst_35 : f32 to vector<8x128xf32>
    %160 = arith.mulf %158, %159 : vector<8x128xf32>
    %161 = arith.addf %125, %160 : vector<8x128xf32>
    %cst_36 = arith.constant 0.534522474 : f32
    %162 = vector.broadcast %cst_36 : f32 to vector<8x128xf32>
    %163 = arith.mulf %158, %162 : vector<8x128xf32>
    %164 = arith.addf %128, %163 : vector<8x128xf32>
    %165 = arith.mulf %11, %31 : vector<8x128xf32>
    %cst_37 = arith.constant 0.462910056 : f32
    %166 = vector.broadcast %cst_37 : f32 to vector<8x128xf32>
    %167 = arith.mulf %165, %166 : vector<8x128xf32>
    %168 = arith.subf %121, %167 : vector<8x128xf32>
    %169 = arith.mulf %11, %33 : vector<8x128xf32>
    %cst_38 = arith.constant 0.534522474 : f32
    %170 = vector.broadcast %cst_38 : f32 to vector<8x128xf32>
    %171 = arith.mulf %169, %170 : vector<8x128xf32>
    %172 = arith.addf %149, %171 : vector<8x128xf32>
    %173 = arith.mulf %11, %35 : vector<8x128xf32>
    %cst_39 = arith.constant 0.462910056 : f32
    %174 = vector.broadcast %cst_39 : f32 to vector<8x128xf32>
    %175 = arith.mulf %173, %174 : vector<8x128xf32>
    %176 = arith.subf %88, %175 : vector<8x128xf32>
    %177 = arith.mulf %13, %21 : vector<8x128xf32>
    %178 = arith.addf %176, %177 : vector<8x128xf32>
    %179 = arith.mulf %13, %23 : vector<8x128xf32>
    %cst_40 = arith.constant 0.547722578 : f32
    %180 = vector.broadcast %cst_40 : f32 to vector<8x128xf32>
    %181 = arith.mulf %179, %180 : vector<8x128xf32>
    %182 = arith.subf %143, %181 : vector<8x128xf32>
    %183 = arith.mulf %13, %25 : vector<8x128xf32>
    %cst_41 = arith.constant 0.547722578 : f32
    %184 = vector.broadcast %cst_41 : f32 to vector<8x128xf32>
    %185 = arith.mulf %183, %184 : vector<8x128xf32>
    %186 = arith.subf %157, %185 : vector<8x128xf32>
    %187 = arith.mulf %13, %29 : vector<8x128xf32>
    %cst_42 = arith.constant 0.462910056 : f32
    %188 = vector.broadcast %cst_42 : f32 to vector<8x128xf32>
    %189 = arith.mulf %187, %188 : vector<8x128xf32>
    %190 = arith.subf %168, %189 : vector<8x128xf32>
    %191 = arith.mulf %13, %31 : vector<8x128xf32>
    %cst_43 = arith.constant 0.44721359 : f32
    %192 = vector.broadcast %cst_43 : f32 to vector<8x128xf32>
    %193 = arith.mulf %191, %192 : vector<8x128xf32>
    %194 = arith.addf %161, %193 : vector<8x128xf32>
    %cst_44 = arith.constant 0.267261237 : f32
    %195 = vector.broadcast %cst_44 : f32 to vector<8x128xf32>
    %196 = arith.mulf %191, %195 : vector<8x128xf32>
    %197 = arith.subf %164, %196 : vector<8x128xf32>
    %cst_45 = arith.constant 0.462910056 : f32
    %198 = vector.broadcast %cst_45 : f32 to vector<8x128xf32>
    %199 = arith.mulf %191, %198 : vector<8x128xf32>
    %200 = arith.addf %131, %199 : vector<8x128xf32>
    %201 = arith.mulf %13, %33 : vector<8x128xf32>
    %cst_46 = arith.constant 0.267261237 : f32
    %202 = vector.broadcast %cst_46 : f32 to vector<8x128xf32>
    %203 = arith.mulf %201, %202 : vector<8x128xf32>
    %204 = arith.subf %178, %203 : vector<8x128xf32>
    %205 = arith.mulf %13, %35 : vector<8x128xf32>
    %cst_47 = arith.constant 0.462910056 : f32
    %206 = vector.broadcast %cst_47 : f32 to vector<8x128xf32>
    %207 = arith.mulf %205, %206 : vector<8x128xf32>
    %208 = arith.subf %172, %207 : vector<8x128xf32>
    %209 = arith.mulf %13, %37 : vector<8x128xf32>
    %cst_48 = arith.constant 0.462910056 : f32
    %210 = vector.broadcast %cst_48 : f32 to vector<8x128xf32>
    %211 = arith.mulf %209, %210 : vector<8x128xf32>
    %212 = arith.addf %204, %211 : vector<8x128xf32>
    %213 = arith.mulf %15, %21 : vector<8x128xf32>
    %214 = arith.addf %197, %213 : vector<8x128xf32>
    %215 = arith.mulf %15, %23 : vector<8x128xf32>
    %cst_49 = arith.constant 0.316227764 : f32
    %216 = vector.broadcast %cst_49 : f32 to vector<8x128xf32>
    %217 = arith.mulf %215, %216 : vector<8x128xf32>
    %218 = arith.addf %186, %217 : vector<8x128xf32>
    %219 = arith.mulf %15, %25 : vector<8x128xf32>
    %cst_50 = arith.constant 0.632455527 : f32
    %220 = vector.broadcast %cst_50 : f32 to vector<8x128xf32>
    %221 = arith.mulf %219, %220 : vector<8x128xf32>
    %222 = arith.subf %182, %221 : vector<8x128xf32>
    %223 = arith.mulf %15, %27 : vector<8x128xf32>
    %cst_51 = arith.constant 0.316227764 : f32
    %224 = vector.broadcast %cst_51 : f32 to vector<8x128xf32>
    %225 = arith.mulf %223, %224 : vector<8x128xf32>
    %226 = arith.addf %153, %225 : vector<8x128xf32>
    %227 = arith.mulf %15, %29 : vector<8x128xf32>
    %cst_52 = arith.constant 0.534522474 : f32
    %228 = vector.broadcast %cst_52 : f32 to vector<8x128xf32>
    %229 = arith.mulf %227, %228 : vector<8x128xf32>
    %230 = arith.addf %208, %229 : vector<8x128xf32>
    %231 = arith.mulf %15, %31 : vector<8x128xf32>
    %cst_53 = arith.constant 0.267261237 : f32
    %232 = vector.broadcast %cst_53 : f32 to vector<8x128xf32>
    %233 = arith.mulf %231, %232 : vector<8x128xf32>
    %234 = arith.subf %212, %233 : vector<8x128xf32>
    %235 = arith.mulf %15, %33 : vector<8x128xf32>
    %cst_54 = arith.constant 0.44721359 : f32
    %236 = vector.broadcast %cst_54 : f32 to vector<8x128xf32>
    %237 = arith.mulf %235, %236 : vector<8x128xf32>
    %238 = arith.addf %194, %237 : vector<8x128xf32>
    %cst_55 = arith.constant 0.534522474 : f32
    %239 = vector.broadcast %cst_55 : f32 to vector<8x128xf32>
    %240 = arith.mulf %235, %239 : vector<8x128xf32>
    %241 = arith.subf %214, %240 : vector<8x128xf32>
    %242 = arith.mulf %15, %35 : vector<8x128xf32>
    %cst_56 = arith.constant 0.267261237 : f32
    %243 = vector.broadcast %cst_56 : f32 to vector<8x128xf32>
    %244 = arith.mulf %242, %243 : vector<8x128xf32>
    %245 = arith.subf %190, %244 : vector<8x128xf32>
    %246 = arith.mulf %15, %37 : vector<8x128xf32>
    %cst_57 = arith.constant 0.534522474 : f32
    %247 = vector.broadcast %cst_57 : f32 to vector<8x128xf32>
    %248 = arith.mulf %246, %247 : vector<8x128xf32>
    %249 = arith.addf %200, %248 : vector<8x128xf32>
    %250 = arith.mulf %17, %21 : vector<8x128xf32>
    %251 = arith.addf %245, %250 : vector<8x128xf32>
    %252 = arith.mulf %17, %25 : vector<8x128xf32>
    %cst_58 = arith.constant 0.547722578 : f32
    %253 = vector.broadcast %cst_58 : f32 to vector<8x128xf32>
    %254 = arith.mulf %252, %253 : vector<8x128xf32>
    %255 = arith.subf %226, %254 : vector<8x128xf32>
    %256 = arith.mulf %17, %27 : vector<8x128xf32>
    %cst_59 = arith.constant 0.547722578 : f32
    %257 = vector.broadcast %cst_59 : f32 to vector<8x128xf32>
    %258 = arith.mulf %256, %257 : vector<8x128xf32>
    %259 = arith.subf %222, %258 : vector<8x128xf32>
    %260 = arith.mulf %17, %29 : vector<8x128xf32>
    %cst_60 = arith.constant 0.462910056 : f32
    %261 = vector.broadcast %cst_60 : f32 to vector<8x128xf32>
    %262 = arith.mulf %260, %261 : vector<8x128xf32>
    %263 = arith.subf %234, %262 : vector<8x128xf32>
    %264 = arith.mulf %17, %31 : vector<8x128xf32>
    %cst_61 = arith.constant 0.462910056 : f32
    %265 = vector.broadcast %cst_61 : f32 to vector<8x128xf32>
    %266 = arith.mulf %264, %265 : vector<8x128xf32>
    %267 = arith.subf %230, %266 : vector<8x128xf32>
    %268 = arith.mulf %17, %33 : vector<8x128xf32>
    %cst_62 = arith.constant 0.267261237 : f32
    %269 = vector.broadcast %cst_62 : f32 to vector<8x128xf32>
    %270 = arith.mulf %268, %269 : vector<8x128xf32>
    %271 = arith.subf %251, %270 : vector<8x128xf32>
    %272 = arith.mulf %17, %35 : vector<8x128xf32>
    %cst_63 = arith.constant 0.44721359 : f32
    %273 = vector.broadcast %cst_63 : f32 to vector<8x128xf32>
    %274 = arith.mulf %272, %273 : vector<8x128xf32>
    %275 = arith.addf %238, %274 : vector<8x128xf32>
    %cst_64 = arith.constant 0.267261237 : f32
    %276 = vector.broadcast %cst_64 : f32 to vector<8x128xf32>
    %277 = arith.mulf %272, %276 : vector<8x128xf32>
    %278 = arith.subf %241, %277 : vector<8x128xf32>
    %cst_65 = arith.constant 0.462910056 : f32
    %279 = vector.broadcast %cst_65 : f32 to vector<8x128xf32>
    %280 = arith.mulf %272, %279 : vector<8x128xf32>
    %281 = arith.subf %249, %280 : vector<8x128xf32>
    %282 = arith.mulf %17, %37 : vector<8x128xf32>
    %cst_66 = arith.constant 0.462910056 : f32
    %283 = vector.broadcast %cst_66 : f32 to vector<8x128xf32>
    %284 = arith.mulf %282, %283 : vector<8x128xf32>
    %285 = arith.subf %271, %284 : vector<8x128xf32>
    %286 = arith.mulf %19, %21 : vector<8x128xf32>
    %287 = arith.addf %281, %286 : vector<8x128xf32>
    %288 = arith.mulf %19, %23 : vector<8x128xf32>
    %cst_67 = arith.constant 0.547722578 : f32
    %289 = vector.broadcast %cst_67 : f32 to vector<8x128xf32>
    %290 = arith.mulf %288, %289 : vector<8x128xf32>
    %291 = arith.addf %218, %290 : vector<8x128xf32>
    %292 = arith.mulf %19, %27 : vector<8x128xf32>
    %cst_68 = arith.constant 0.547722578 : f32
    %293 = vector.broadcast %cst_68 : f32 to vector<8x128xf32>
    %294 = arith.mulf %292, %293 : vector<8x128xf32>
    %295 = arith.subf %255, %294 : vector<8x128xf32>
    %296 = arith.mulf %19, %31 : vector<8x128xf32>
    %cst_69 = arith.constant 0.462910056 : f32
    %297 = vector.broadcast %cst_69 : f32 to vector<8x128xf32>
    %298 = arith.mulf %296, %297 : vector<8x128xf32>
    %299 = arith.addf %263, %298 : vector<8x128xf32>
    %300 = arith.mulf %19, %33 : vector<8x128xf32>
    %cst_70 = arith.constant 0.534522474 : f32
    %301 = vector.broadcast %cst_70 : f32 to vector<8x128xf32>
    %302 = arith.mulf %300, %301 : vector<8x128xf32>
    %303 = arith.addf %287, %302 : vector<8x128xf32>
    %304 = arith.mulf %19, %35 : vector<8x128xf32>
    %cst_71 = arith.constant 0.462910056 : f32
    %305 = vector.broadcast %cst_71 : f32 to vector<8x128xf32>
    %306 = arith.mulf %304, %305 : vector<8x128xf32>
    %307 = arith.subf %285, %306 : vector<8x128xf32>
    %308 = arith.mulf %19, %37 : vector<8x128xf32>
    %cst_72 = arith.constant 0.44721359 : f32
    %309 = vector.broadcast %cst_72 : f32 to vector<8x128xf32>
    %310 = arith.mulf %308, %309 : vector<8x128xf32>
    %311 = arith.addf %275, %310 : vector<8x128xf32>
    %cst_73 = arith.constant 0.534522474 : f32
    %312 = vector.broadcast %cst_73 : f32 to vector<8x128xf32>
    %313 = arith.mulf %308, %312 : vector<8x128xf32>
    %314 = arith.addf %278, %313 : vector<8x128xf32>
    %315 = arith.index_cast %1 : i32 to index
    %c0_74 = arith.constant 0 : index
    %316 = vector.load %arg3[%315, %c0_74] : memref<8x1152xf32, #tpu.memory_space<vmem>>, vector<8x128xf32>
    tpu.vector_store %arg3[%315, %c0_74], %311 {strides = array<i32>} : memref<8x1152xf32, #tpu.memory_space<vmem>>, vector<8x128xf32>,
    %317 = arith.index_cast %1 : i32 to index
    %c128_75 = arith.constant 128 : index
    %318 = vector.load %arg3[%317, %c128_75] : memref<8x1152xf32, #tpu.memory_space<vmem>>, vector<8x128xf32>
    tpu.vector_store %arg3[%317, %c128_75], %291 {strides = array<i32>} : memref<8x1152xf32, #tpu.memory_space<vmem>>, vector<8x128xf32>,
    %319 = arith.index_cast %1 : i32 to index
    %c256_76 = arith.constant 256 : index
    %320 = vector.load %arg3[%319, %c256_76] : memref<8x1152xf32, #tpu.memory_space<vmem>>, vector<8x128xf32>
    tpu.vector_store %arg3[%319, %c256_76], %259 {strides = array<i32>} : memref<8x1152xf32, #tpu.memory_space<vmem>>, vector<8x128xf32>,
    %321 = arith.index_cast %1 : i32 to index
    %c384_77 = arith.constant 384 : index
    %322 = vector.load %arg3[%321, %c384_77] : memref<8x1152xf32, #tpu.memory_space<vmem>>, vector<8x128xf32>
    tpu.vector_store %arg3[%321, %c384_77], %295 {strides = array<i32>} : memref<8x1152xf32, #tpu.memory_space<vmem>>, vector<8x128xf32>,
    %323 = arith.index_cast %1 : i32 to index
    %c512_78 = arith.constant 512 : index
    %324 = vector.load %arg3[%323, %c512_78] : memref<8x1152xf32, #tpu.memory_space<vmem>>, vector<8x128xf32>
    tpu.vector_store %arg3[%323, %c512_78], %267 {strides = array<i32>} : memref<8x1152xf32, #tpu.memory_space<vmem>>, vector<8x128xf32>,
    %325 = arith.index_cast %1 : i32 to index
    %c640_79 = arith.constant 640 : index
    %326 = vector.load %arg3[%325, %c640_79] : memref<8x1152xf32, #tpu.memory_space<vmem>>, vector<8x128xf32>
    tpu.vector_store %arg3[%325, %c640_79], %299 {strides = array<i32>} : memref<8x1152xf32, #tpu.memory_space<vmem>>, vector<8x128xf32>,
    %327 = arith.index_cast %1 : i32 to index
    %c768_80 = arith.constant 768 : index
    %328 = vector.load %arg3[%327, %c768_80] : memref<8x1152xf32, #tpu.memory_space<vmem>>, vector<8x128xf32>
    tpu.vector_store %arg3[%327, %c768_80], %314 {strides = array<i32>} : memref<8x1152xf32, #tpu.memory_space<vmem>>, vector<8x128xf32>,
    %329 = arith.index_cast %1 : i32 to index
    %c896_81 = arith.constant 896 : index
    %330 = vector.load %arg3[%329, %c896_81] : memref<8x1152xf32, #tpu.memory_space<vmem>>, vector<8x128xf32>
    tpu.vector_store %arg3[%329, %c896_81], %307 {strides = array<i32>} : memref<8x1152xf32, #tpu.memory_space<vmem>>, vector<8x128xf32>,
    %331 = arith.index_cast %1 : i32 to index
    %c1024_82 = arith.constant 1024 : index
    %332 = vector.load %arg3[%331, %c1024_82] : memref<8x1152xf32, #tpu.memory_space<vmem>>, vector<8x128xf32>
    tpu.vector_store %arg3[%331, %c1024_82], %303 {strides = array<i32>} : memref<8x1152xf32, #tpu.memory_space<vmem>>, vector<8x128xf32>,
    %c1_i32 = arith.constant 1 : i32
    return
  }
  func.func @transform_0(%arg0: i32) -> (i32, i32) {
    %c0_i32 = arith.constant 0 : i32
    %c0_i32_0 = arith.constant 0 : i32
    return %arg0, %c0_i32 : i32, i32
  }
  func.func @transform_1(%arg0: i32) -> (i32, i32) {
    %c0_i32 = arith.constant 0 : i32
    %c0_i32_0 = arith.constant 0 : i32
    return %arg0, %c0_i32 : i32, i32
  }
  func.func @transform_2(%arg0: i32) -> (i32, i32) {
    %c0_i32 = arith.constant 0 : i32
    %c0_i32_0 = arith.constant 0 : i32
    return %arg0, %c0_i32 : i32, i32
  }
}

</mosaic_0001>

<bundles_post_ra>
// kernel: tpu_custom_call.1
= control target key start
LH: loop header
LB: loop body
LE: loop exit
PB: predicated region body
PF: predicated region fallthrough
CT: control target
= control target key end

     0   :  { %7 = vsyncpa [#allocation3], 0  ;;  %s1201_s0 = inlined_call_operand.hbm [shape: f32[16,1152], index: 0, kind: input, shape index: {}]   ;;  %s1202_s1 = inlined_call_operand.hbm [shape: f32[16,1152], index: 1, kind: input, shape index: {}]   ;;  %s1203_s2 = inlined_call_operand.hbm [shape: f32[16,1152], index: 2, kind: output, shape index: {}]  }
   0x1   :  { %9 = vsyncpa [#allocation3 + $0x1], 0 }
   0x2   :  { %10 = vsyncpa [#allocation6], 0 }
   0x3   :  { %12 = vsyncpa [#allocation6 + $0x1], 0 }
   0x4   :  { %13 = vsyncpa [#allocation4], 0 }
   0x5   :  { %15 = vsyncpa [#allocation4 + $0x1], 0  ;;  %s767_s9 = smov 0   ;;  %s769_s10 = smov 0  }
   0x6   :  { %s771_s11 = smov 0   ;;  %s773_s12 = smov 0  }
   0x7 LB: > { %s788_s13 = sadd.s32 4294967295, %s747_s12   ;;  %s551_s14 = sadd.s32 4294967294, %s747_s12   ;;  %s747_s12 = sphi %s773_s12, %s1221_s12   ;;  %s743_s11 = sphi %s771_s11, %s1220_s11   ;;  %s739_s10 = sphi %s769_s10, %s1219_s10   ;;  %s735_s9 = sphi %s767_s9, %s1218_s9  }
   0x8   : > { %s792_s15 = sadd.s32 1, %s747_s12   ;;  %s28_s16 = sadd.s32 1, %s743_s11 }
   0x9   : > { %s25_s17 = ssub.s32 %s747_s12, %s792_s15  ;;  %p35_p0 = scmp.ne.s32.totalorder %s743_s11, %s739_s10 }
   0xa   : > { %p26_p1 = scmp.eq.s32.totalorder %s25_s17, 0  ;;  %p36_p2 = scmp.eq.s32.totalorder %s747_s12, 0 }
   0xb   : > { %p41_p3 = scmp.ne.s32.totalorder %s739_s10, %s735_s9  ;;  %p42_p4 = scmp.eq.s32.totalorder %s788_s13, 0 }
   0xc   : > { %s804_s18 = scalar_select %p26_p1, %s743_s11, %s28_s16  }
   0xd   : > { %p37_p5 = por %p36_p2, %p35_p0  ;;  %p806_p6 = por %p42_p4, %p41_p3 }
   0xe   : > { %p91_p7 = scmp.eq.s32.totalorder %s788_s13, 1  ;;  %p97_p8 = scmp.eq.s32.totalorder %s551_s14, 1 }
   0xf   : > { %s1206_s19 = scalar_select %p806_p6, 1, 0 }
  0x10   : > { %p583_p10 = scmp.lt.s32.totalorder %s747_s12, 2  ;;  %p813_p11 = por %p91_p7, %p35_p0 }
  0x11   : > { %p817_p12 = por %p97_p8, %p41_p3  ;;  %s822_s22 = sand.u32 1, %s743_s11  }
  0x12   : > { %s1207_s20 = scalar_select %p813_p11, 1, 0 }
  0x13   : > { %s1208_s21 = scalar_select %p817_p12, 1, 0 }
  0x14   : > { %s561_s23 = smul.u32 1152, %s747_s12  ;;  %p833_p13 = pnand %p583_p10, %p37_p5 }
  0x15   : > { %s560_s24 = smul.u32 72, %s822_s22  ;;  %s118_s3 = scalar_lea.sflag [#allocation3], %s822_s22 }
  0x16   : > { %s831_s27 = scalar_lea.hbm %s1201_s0, %s561_s23  ;;  %p619_p3 = pneg %p833_p13 }
  0x17   : > { %s121_s29 = scalar_lea.vmem [#allocation2], %s560_s24  ;;  %s617_s4 = scalar_lea.hbm %s831_s27, 1152 }
  0x18   : > { %s129_s30 = sshll.u32 %s121_s29, 4  ;;  %p618_p2 = scmp.ne.s32.totalorder %s831_s27, %s617_s4  ;;  %s840_s30 = int_to_ptr.vmem [resolvable:$true] %s129_s30 }
  0x19   : > { %s622_s7 = scalar_lea.hbm %s1201_s0, 2304  ;;  %p623_p7 = scmp.lt.u32.totalorder %s831_s27, %s1201_s0 }
  0x1a   : > { %p620_p4 = pnand %p619_p3, %p618_p2  ;;  %p624_p8 = scmp.lt.u32.totalorder %s622_s7, %s617_s4 }
  0x1b   : > { %p626_p9 = scmp.lt.u32.totalorder %s617_s4, %s831_s27 }
  0x1c   : > { %p621_p5 = pneg %p620_p4  ;;  %p625_p10 = por %p624_p8, %p623_p7 }
  0x1e   : > { %p627_p0 = por %p626_p9, %p625_p10 }
  0x20   : > { %p628_p1 = pnand %p627_p0, %p621_p5 }
  0x22   : > { %631 = shalt.err (!%p628_p1)
}
  0x23   : > { %s632_s16 = scalar_lea.vmem %s840_s30, 1152  ;;  %s749_s17 = smov [#allocation2]  }
  0x24   : > { %p633_p2 = scmp.ne.s32.totalorder %s840_s30, %s632_s16  ;;  %s637_s25 = sshll.u32 %s749_s17, 4  ;;  %s638_s25 = int_to_ptr.vmem [resolvable:$false] %s637_s25 }
  0x25   : > { %s639_s26 = scalar_lea.vmem %s638_s25, 2304  ;;  %p640_p11 = scmp.lt.s32.totalorder %s840_s30, %s638_s25 }
  0x26   : > { %p635_p4 = pnand %p633_p2, %p619_p3  ;;  %p641_p7 = scmp.lt.s32.totalorder %s639_s26, %s632_s16 }
  0x28   : > { %p636_p12 = pneg %p635_p4  ;;  %p642_p8 = por %p641_p7, %p640_p11 }
  0x2a   : > { %p643_p9 = pnand %p642_p8, %p636_p12 }
  0x2c   : > { %646 = shalt.err (!%p643_p9)
}
  0x2d   : > { %575 = dma.hbm_to_vmem [thread:$0]  (!%p833_p13), %s831_s27, 1152, %s840_s30, %s118_s3  }
  0x2e   : > { %p1210_p0 = scmp.lt.s32.totalorder %s747_s12, 3  ;;  %p1211_p1 = scmp.ge.s32.totalorder %s747_s12, 1 }
  0x2f   : > { %s882_s6 = scalar_lea.hbm %s1202_s1, %s561_s23  ;;  %s140_s7 = scalar_lea.vmem [#allocation5], %s560_s24 }
  0x30   : > { %p873_p5 = pnand %p1211_p1, %p1210_p0  ;;  %s148_s8 = sshll.u32 %s140_s7, 4  ;;  %s149_s8 = int_to_ptr.vmem [resolvable:$true] %s148_s8 }
  0x31   : > { %s137_s27 = scalar_lea.sflag [#allocation6], %s822_s22  ;;  %s647_s30 = scalar_lea.hbm %s882_s6, 1152 }
  0x32   : > { %s1212_s29 = scalar_select %p873_p5, 1, 0 }
  0x33   : > { %p648_p11 = scmp.ne.s32.totalorder %s882_s6, %s647_s30  ;;  %s652_s23 = scalar_lea.hbm %s1202_s1, 2304 }
  0x34   : > { %p653_p2 = scmp.lt.u32.totalorder %s882_s6, %s1202_s1  ;;  %p654_p4 = scmp.lt.u32.totalorder %s652_s23, %s647_s30 }
  0x35   : > { %p650_p12 = pnand %p648_p11, %p619_p3  ;;  %p656_p8 = scmp.lt.u32.totalorder %s647_s30, %s882_s6 }
  0x36   : > { %p655_p7 = por %p654_p4, %p653_p2 }
  0x37   : > { %p651_p10 = pneg %p650_p12 }
  0x38   : > { %p657_p9 = por %p656_p8, %p655_p7 }
  0x3a   : > { %p658_p0 = pnand %p657_p9, %p651_p10 }
  0x3c   : > { %661 = shalt.err (!%p658_p0)
}
  0x3d   : > { %s662_s22 = scalar_lea.vmem %s149_s8, 1152  ;;  %s750_s24 = smov [#allocation5]  }
  0x3e   : > { %p663_p1 = scmp.ne.s32.totalorder %s149_s8, %s662_s22  ;;  %s667_s25 = sshll.u32 %s750_s24, 4  ;;  %s668_s25 = int_to_ptr.vmem [resolvable:$false] %s667_s25 }
  0x3f   : > { %s669_s26 = scalar_lea.vmem %s668_s25, 2304  ;;  %p670_p6 = scmp.lt.s32.totalorder %s149_s8, %s668_s25 }
  0x40   : > { %p665_p11 = pnand %p663_p1, %p619_p3  ;;  %p671_p5 = scmp.lt.s32.totalorder %s669_s26, %s662_s22 }
  0x42   : > { %p666_p12 = pneg %p665_p11  ;;  %p672_p2 = por %p671_p5, %p670_p6 }
  0x44   : > { %p673_p4 = pnand %p672_p2, %p666_p12 }
  0x46   : > { %676 = shalt.err (!%p673_p4)
}
  0x47   : > { %578 = dma.hbm_to_vmem [thread:$0]  (!%p833_p13), %s882_s6, 1152, %s149_s8, %s137_s27  }
  0x48   : > { %p1213_p10 = scmp.ne.s32.totalorder %s1212_s29, 0 }
  0x49   : > { %s909_s4 = sand.u32 (!%p1213_p10), 1, %s739_s10   ;;  %p1214_p6 = scmp.ne.s32.totalorder (!%p1213_p10), %s1206_s19, 0 }
  0x4a   : > { %157 = sbr.rel (%p1213_p10) target bundleno = 160 (0xa0), region = 28  ;;  %s160_s7 = scalar_lea.sflag (!%p1213_p10), [#allocation3], %s909_s4 }
  0x4b   : > { %s912_s5 = smul.u32 (!%p1213_p10), 72, %s909_s4 }
  0x4d   : > { %s163_s30 = scalar_lea.vmem (!%p1213_p10), [#allocation2], %s912_s5 }
  0x51   : > { %722 = dma.done.wait (%p1214_p6), %s160_s7, 1152  }
  0x52   : > { %724 = vsyncadd (%p1214_p6), %s160_s7, 4294966144  ;;  %s169_s28 = scalar_lea.sflag [#allocation6], %s909_s4  ;;  %s172_s29 = scalar_lea.vmem [#allocation5], %s912_s5 }
  0x53   : > { %726 = dma.done.wait (%p1214_p6), %s169_s28, 1152  }
  0x54   : > { %728 = vsyncadd (%p1214_p6), %s169_s28, 4294966144  ;;  %v926_v0 = vld [vmem:[%s163_s30 + $0x8] sm:$0xff]  ;;  %v928_v1 = vld [vmem:[%s163_s30] sm:$0xff]  ;;  %s1055_s19 = scalar_lea.vmem [#allocation7], %s912_s5  ;;  %s565_s6 = smul.u32 1152, %s788_s13 }
  0x55   : > { %v930_v2 = vld [vmem:[%s163_s30 + $0x10] sm:$0xff]  ;;  %v932_v3 = vld [vmem:[%s163_s30 + $0x18] sm:$0xff]  ;;  %v938_v6 = vld [vmem:[%s172_s29 + $0x10] sm:$0xff]  ;;  %s458_s8 = sshll.u32 %s1055_s19, 4  ;;  %s444_s23 = scalar_lea.sflag [#allocation4], %s909_s4  ;;  %s1157_s8 = int_to_ptr.vmem [resolvable:$true] %s458_s8 }
  0x56   : > { %v934_v4 = vld [vmem:[%s172_s29] sm:$0xff]  ;;  %v936_v5 = vld [vmem:[%s172_s29 + $0x8] sm:$0xff]  ;;  %v940_v7 = vld [vmem:[%s163_s30 + $0x20] sm:$0xff]  ;;  %v958_v14 = vmul.f32 %v938_v6, %v930_v2  ;;  %v223_v54 = vmul.f32 %v938_v6, %v928_v1  ;;  %s1155_s14 = scalar_lea.hbm %s1203_s2, %s565_s6  ;;  %s677_s16 = scalar_lea.vmem %s1157_s8, 1152 }
  0x57   : > { %v942_v8 = vld [vmem:[%s163_s30 + $0x28] sm:$0xff]  ;;  %v944_v9 = vld [vmem:[%s163_s30 + $0x30] sm:$0xff]  ;;  %v946_v10 = vld [vmem:[%s163_s30 + $0x38] sm:$0xff]  ;;  %v221_v12 = vmul.f32 %v934_v4, %v928_v1  ;;  %v954_v13 = vmul.f32 %v936_v5, %v926_v0  ;;  %v222_v18 = vmul.f32 %v936_v5, %v928_v1  ;;  %v230_v19 = vmul.f32 %v934_v4, %v926_v0  ;;  %p678_p13 = scmp.ne.s32.totalorder %s1157_s8, %s677_s16  ;;  %p1215_p3 = scmp.ne.s32.totalorder %s1207_s20, 0 }
  0x58   : > { %v948_v11 = vld [vmem:[%s163_s30 + $0x40] sm:$0xff]  ;;  %v960_v15 = vld [vmem:[%s172_s29 + $0x18] sm:$0xff]  ;;  %v962_v16 = vld [vmem:[%s172_s29 + $0x20] sm:$0xff]  ;;  %v263_v23 = vmul.f32 0.57735026, %v958_v14  ;;  %v333_v44 = vmul.f32 %v938_v6, %v942_v8  ;;  %v357_v48 = vmul.f32 %v936_v5, %v944_v9  ;;  %s751_s13 = smov [#allocation7]  }
  0x59   : > { %v964_v17 = vld [vmem:[%s172_s29 + $0x28] sm:$0xff]  ;;  %v970_v20 = vld [vmem:[%s172_s29 + $0x30] sm:$0xff]  ;;  %v972_v21 = vld [vmem:[%s172_s29 + $0x40] sm:$0xff]  ;;  %v233_v22 = vmul.f32 0.57735026, %v954_v13  ;;  %v978_v24 = vmul.f32 %v960_v15, %v932_v3  ;;  %v984_v26 = vmul.f32 %v962_v16, %v940_v7  ;;  %v231_v33 = vadd.f32 %v230_v19, %v222_v18  ;;  %p679_p5 = pnand %p678_p13, %p1215_p3  ;;  %s681_s17 = sshll.u32 %s751_s13, 4  ;;  %s682_s17 = int_to_ptr.vmem [resolvable:$false] %s681_s17 }
  0x5a   : > { %v980_v25 = vld [vmem:[%s172_s29 + $0x38] sm:$0xff]  ;;  %v988_v27 = vmul.f32 %v964_v17, %v942_v8  ;;  %v992_v28 = vmul.f32 %v970_v20, %v944_v9  ;;  %v1001_v32 = vmul.f32 %v972_v21, %v948_v11  ;;  %v251_v34 = vmul.f32 %v970_v20, %v926_v0  ;;  %s683_s22 = scalar_lea.vmem %s682_s17, 2304  ;;  %p684_p8 = scmp.lt.s32.totalorder %s1157_s8, %s682_s17 }
  0x5b   : > { %v234_v29 = vsub.f32 %v221_v12, %v233_v22  ;;  %v288_v30 = vmul.f32 0.57735026, %v978_v24  ;;  %v997_v31 = vmul.f32 %v980_v25, %v946_v10  ;;  %v254_v35 = vmul.f32 %v972_v21, %v926_v0  ;;  %p680_p7 = pneg %p679_p5  ;;  %p685_p9 = scmp.lt.s32.totalorder %s683_s22, %s677_s16 }
  0x5c   : > { %v270_v36 = vmul.f32 %v964_v17, %v930_v2  ;;  %v315_v38 = vmul.f32 0.4472136, %v984_v26  ;;  %v340_v39 = vmul.f32 0.4472136, %v988_v27  ;;  %v294_v40 = vmul.f32 %v962_v16, %v932_v3 }
  0x5d   : > { %v264_v37 = vsub.f32 %v234_v29, %v263_v23  ;;  %v252_v41 = vmul.f32 0.31622776, %v251_v34  ;;  %v255_v42 = vmul.f32 0.5477226, %v254_v35  ;;  %v311_v43 = vmul.f32 %v960_v15, %v940_v7  ;;  %p686_p0 = por %p685_p9, %p684_p8 }
  0x5e   : > { %v373_v46 = vmul.f32 0.4472136, %v992_v28  ;;  %v401_v47 = vmul.f32 0.4472136, %v997_v31  ;;  %v428_v49 = vmul.f32 0.4472136, %v1001_v32  ;;  %v248_v55 = vmul.f32 %v964_v17, %v926_v0 }
  0x5f   : > { %v289_v45 = vsub.f32 %v264_v37, %v288_v30  ;;  %v253_v50 = vadd.f32 %v252_v41, %v231_v33  ;;  %v271_v51 = vmul.f32 0.5477226, %v270_v36  ;;  %v295_v52 = vmul.f32 0.5477226, %v294_v40  ;;  %p687_p1 = pnand %p686_p0, %p680_p7 }
  0x60   : > { %v273_v56 = vmul.f32 %v970_v20, %v930_v2  ;;  %v312_v58 = vmul.f32 0.5477226, %v311_v43  ;;  %v334_v59 = vmul.f32 0.5477226, %v333_v44  ;;  %v300_v60 = vmul.f32 %v980_v25, %v932_v3 }
  0x61   : > { %v316_v53 = vadd.f32 %v315_v38, %v289_v45  ;;  %v256_v57 = vadd.f32 %v255_v42, %v253_v50  ;;  %v358_v62 = vmul.f32 0.31622776, %v357_v48  ;;  %v249_v63 = vmul.f32 0.5477226, %v248_v55 }
  0x62   : > { %v257_v12 = vmul.f32 %v934_v4, %v930_v2  ;;  %v412_v19 = vmul.f32 %v936_v5, %v948_v11  ;;  %v274_v22 = vmul.f32 0.6324555, %v273_v56  ;;  %v330_v23 = vmul.f32 %v936_v5, %v942_v8 }
  0x63   : > { %v341_v61 = vadd.f32 %v340_v39, %v316_v53  ;;  %v272_v18 = vsub.f32 %v256_v57, %v271_v51  ;;  %v250_v30 = vsub.f32 %v223_v54, %v249_v63  ;;  %v301_v33 = vmul.f32 0.5477226, %v300_v60 }
  0x64   : > { %v360_v34 = vmul.f32 %v938_v6, %v944_v9  ;;  %v224_v36 = vmul.f32 %v960_v15, %v928_v1  ;;  %v245_v37 = vmul.f32 %v962_v16, %v926_v0  ;;  %v276_v38 = vmul.f32 %v980_v25, %v930_v2 }
  0x65   : > { %v374_v29 = vadd.f32 %v373_v46, %v341_v61  ;;  %v296_v35 = vsub.f32 %v272_v18, %v295_v52  ;;  %v258_v40 = vadd.f32 %v257_v12, %v250_v30  ;;  %v388_v41 = vmul.f32 %v960_v15, %v946_v10 }
  0x66   : > { %v297_v42 = vmul.f32 %v970_v20, %v932_v3  ;;  %v246_v44 = vmul.f32 0.5477226, %v245_v37  ;;  %v277_v45 = vmul.f32 0.5477226, %v276_v38  ;;  %v303_v46 = vmul.f32 %v972_v21, %v932_v3 }
  0x67   : > { %v402_v39 = vadd.f32 %v401_v47, %v374_v29  ;;  %v313_v43 = vsub.f32 %v296_v35, %v312_v58  ;;  %v413_v50 = vmul.f32 0.5477226, %v412_v19  ;;  %v275_v51 = vsub.f32 %v258_v40, %v274_v22 }
  0x68   : > { %v331_v52 = vmul.f32 0.5477226, %v330_v23  ;;  %v247_v47 = vsub.f32 %v224_v36, %v246_v44  ;;  %v279_v54 = vmul.f32 %v934_v4, %v932_v3  ;;  %v308_v55 = vmul.f32 %v936_v5, %v940_v7 }
  0x69   : > { %v429_v48 = vadd.f32 %v428_v49, %v402_v39  ;;  %v335_v53 = vsub.f32 %v313_v43, %v334_v59  ;;  %v302_v56 = vsub.f32 %v275_v51, %v301_v33  ;;  %v361_v57 = vmul.f32 0.6324555, %v360_v34 }
  0x6a   : > { %v389_v58 = vmul.f32 0.5477226, %v388_v41  ;;  %v278_v49 = vsub.f32 %v247_v47, %v277_v45  ;;  %v298_v61 = vmul.f32 0.31622776, %v297_v42  ;;  %v304_v63 = vmul.f32 0.5477226, %v303_v46 }
  0x6b   : > { %434 = vst [vmem:[%s1055_s19] sm:$0xff] %v429_v48  ;;  %v359_v60 = vadd.f32 %v358_v62, %v335_v53  ;;  %v332_v59 = vsub.f32 %v302_v56, %v331_v52  ;;  %v363_v12 = vmul.f32 %v960_v15, %v944_v9  ;;  %v225_v18 = vmul.f32 %v962_v16, %v928_v1 }
  0x6c   : > { %v242_v19 = vmul.f32 %v960_v15, %v926_v0  ;;  %v280_v23 = vadd.f32 %v279_v54, %v278_v49  ;;  %v309_v29 = vmul.f32 0.5477226, %v308_v55  ;;  %v281_v62 = vmul.f32 %v936_v5, %v932_v3 }
  0x6d   : > { %v414_v22 = vadd.f32 %v413_v50, %v359_v60  ;;  %v362_v30 = vsub.f32 %v332_v59, %v361_v57  ;;  %v385_v33 = vmul.f32 %v938_v6, %v946_v10  ;;  %v322_v35 = vmul.f32 %v970_v20, %v940_v7 }
  0x6e   : > { %v243_v34 = vmul.f32 0.70710677, %v242_v19  ;;  %v299_v36 = vadd.f32 %v298_v61, %v280_v23  ;;  %v415_v37 = vmul.f32 %v960_v15, %v948_v11  ;;  %v282_v38 = vmul.f32 0.70710677, %v281_v62 }
  0x6f   : > { %435 = vst [vmem:[%s1055_s19 + $0x8] sm:$0xff] %v414_v22  ;;  %v349_v39 = vmul.f32 %v980_v25, %v942_v8  ;;  %v390_v40 = vsub.f32 %v362_v30, %v389_v58  ;;  %v364_v41 = vmul.f32 0.31622776, %v363_v12  ;;  %v306_v43 = vmul.f32 %v934_v4, %v940_v7 }
  0x70   : > { %v244_v42 = vadd.f32 %v243_v34, %v225_v18  ;;  %v305_v44 = vsub.f32 %v299_v36, %v304_v63  ;;  %v323_v45 = vmul.f32 0.5345225, %v322_v35  ;;  %v366_v46 = vmul.f32 %v962_v16, %v944_v9 }
  0x71   : > { %v226_v48 = vmul.f32 %v964_v17, %v928_v1  ;;  %436 = vst [vmem:[%s1055_s19 + $0x10] sm:$0xff] %v390_v40  ;;  %v239_v51 = vmul.f32 %v938_v6, %v926_v0  ;;  %v259_v52 = vmul.f32 %v936_v5, %v930_v2  ;;  %v325_v53 = vmul.f32 %v980_v25, %v940_v7 }
  0x72   : > { %v283_v50 = vadd.f32 %v282_v38, %v244_v42  ;;  %v310_v47 = vsub.f32 %v305_v44, %v309_v29  ;;  %v386_v54 = vmul.f32 0.5477226, %v385_v33  ;;  %v350_v55 = vmul.f32 0.46291006, %v349_v39 }
  0x73   : > { %v394_v56 = vmul.f32 %v964_v17, %v946_v10  ;;  %v240_v58 = vmul.f32 0.70710677, %v239_v51  ;;  %v260_v60 = vmul.f32 0.70710677, %v259_v52  ;;  %v346_v49 = vmul.f32 %v970_v20, %v942_v8 }
  0x74   : > { %v307_v57 = vadd.f32 %v306_v43, %v283_v50  ;;  %v365_v61 = vadd.f32 %v364_v41, %v310_v47  ;;  %v416_v0 = vmul.f32 0.5477226, %v415_v37  ;;  %v367_v63 = vmul.f32 0.5345225, %v366_v46 }
  0x75   : > { %v241_v5 = vadd.f32 %v240_v58, %v226_v48  ;;  %v326_v12 = vmul.f32 0.46291006, %v325_v53  ;;  %v352_v18 = vmul.f32 %v972_v21, %v942_v8  ;;  %v395_v22 = vmul.f32 0.46291006, %v394_v56 }
  0x76   : > { %v324_v59 = vadd.f32 %v323_v45, %v307_v57  ;;  %v387_v19 = vsub.f32 %v365_v61, %v386_v54  ;;  %v227_v23 = vmul.f32 %v970_v20, %v928_v1  ;;  %v235_v29 = vmul.f32 0.4082483, %v954_v13 }
  0x77   : > { %v261_v30 = vadd.f32 %v260_v60, %v241_v5  ;;  %v328_v33 = vmul.f32 %v934_v4, %v942_v8  ;;  %v347_v34 = vmul.f32 0.26726124, %v346_v49  ;;  %v265_v37 = vmul.f32 0.8164966, %v958_v14 }
  0x78   : > { %v351_v62 = vsub.f32 %v324_v59, %v350_v55  ;;  %v417_v35 = vsub.f32 %v387_v19, %v416_v0  ;;  %v236_v36 = vsub.f32 %v227_v23, %v235_v29  ;;  %v290_v38 = vmul.f32 0.4082483, %v978_v24 }
  0x79   : > { %v327_v40 = vsub.f32 %v261_v30, %v326_v12  ;;  %v353_v41 = vmul.f32 0.46291006, %v352_v18  ;;  %v369_v42 = vmul.f32 %v964_v17, %v944_v9  ;;  %v391_v43 = vmul.f32 %v962_v16, %v946_v10 }
  0x7a   : > { %v368_v39 = vadd.f32 %v367_v63, %v351_v62  ;;  %437 = vst [vmem:[%s1055_s19 + $0x18] sm:$0xff] %v417_v35  ;;  %v418_v44 = vmul.f32 %v964_v17, %v948_v11  ;;  %v266_v45 = vadd.f32 %v265_v37, %v236_v36  ;;  %v317_v46 = vmul.f32 0.5345225, %v984_v26 }
  0x7b   : > { %v329_v48 = vadd.f32 %v328_v33, %v327_v40  ;;  %v342_v50 = vmul.f32 0.26726124, %v988_v27  ;;  %v228_v51 = vmul.f32 %v980_v25, %v928_v1  ;;  %v267_v53 = vmul.f32 %v960_v15, %v930_v2 }
  0x7c   : > { %v396_v14 = vsub.f32 %v368_v39, %v395_v22  ;;  %v291_v52 = vsub.f32 %v266_v45, %v290_v38  ;;  %v284_v47 = vmul.f32 %v938_v6, %v932_v3  ;;  %v319_v54 = vmul.f32 %v964_v17, %v940_v7 }
  0x7d   : > { %v348_v55 = vsub.f32 %v329_v48, %v347_v34  ;;  %v370_v26 = vmul.f32 0.26726124, %v369_v42  ;;  %v355_v56 = vmul.f32 %v934_v4, %v944_v9  ;;  %v336_v57 = vmul.f32 %v962_v16, %v942_v8 }
  0x7e   : > { %438 = vst [vmem:[%s1055_s19 + $0x20] sm:$0xff] %v396_v14  ;;  %v318_v58 = vadd.f32 %v317_v46, %v291_v52  ;;  %v268_v60 = vmul.f32 0.70710677, %v267_v53  ;;  %v285_v49 = vmul.f32 0.70710677, %v284_v47  ;;  %v377_v2 = vmul.f32 %v980_v25, %v944_v9 }
  0x7f   : > { %v354_v15 = vadd.f32 %v353_v41, %v348_v55  ;;  %v392_v3 = vmul.f32 0.46291006, %v391_v43  ;;  %v419_v6 = vmul.f32 0.46291006, %v418_v44  ;;  %v375_v7 = vmul.f32 0.5345225, %v992_v28 }
  0x80   : > { %v343_v17 = vsub.f32 %v318_v58, %v342_v50  ;;  %v403_v61 = vmul.f32 0.26726124, %v997_v31  ;;  %v269_v0 = vadd.f32 %v268_v60, %v228_v51  ;;  %v320_v63 = vmul.f32 0.46291006, %v319_v54 }
  0x81   : > { %v371_v59 = vsub.f32 %v354_v15, %v370_v26  ;;  %v430_v5 = vmul.f32 0.5345225, %v1001_v32  ;;  %v229_v8 = vmul.f32 %v972_v21, %v928_v1  ;;  %v237_v16 = vmul.f32 0.70710677, %v954_v13 }
  0x82   : > { %v356_v12 = vadd.f32 %v355_v56, %v343_v17  ;;  %v286_v18 = vadd.f32 %v285_v49, %v269_v0  ;;  %v337_v19 = vmul.f32 0.46291006, %v336_v57  ;;  %v378_v22 = vmul.f32 0.26726124, %v377_v2 }
  0x83   : > { %v393_v23 = vsub.f32 %v371_v59, %v392_v3  ;;  %v238_v28 = vsub.f32 %v229_v8, %v237_v16  ;;  %v292_v29 = vmul.f32 0.70710677, %v978_v24  ;;  %v344_v62 = vmul.f32 0.46291006, %v988_v27 }
  0x84   : > { %v376_v30 = vsub.f32 %v356_v12, %v375_v7  ;;  %v321_v33 = vsub.f32 %v286_v18, %v320_v63  ;;  %v397_v32 = vmul.f32 %v970_v20, %v946_v10  ;;  %v380_v1 = vmul.f32 %v972_v21, %v944_v9 }
  0x85   : > { %v420_v13 = vadd.f32 %v419_v6, %v393_v23  ;;  %v383_v34 = vmul.f32 %v934_v4, %v946_v10  ;;  %v293_v35 = vadd.f32 %v292_v29, %v238_v28  ;;  %v407_v24 = vmul.f32 %v972_v21, %v946_v10 }
  0x86   : > { %v404_v36 = vsub.f32 %v376_v30, %v403_v61  ;;  %v338_v37 = vsub.f32 %v321_v33, %v337_v19  ;;  %v381_v27 = vmul.f32 0.5345225, %v380_v1  ;;  %v405_v39 = vmul.f32 0.46291006, %v997_v31 }
  0x87   : > { %439 = vst [vmem:[%s1055_s19 + $0x28] sm:$0xff] %v420_v13  ;;  %v345_v38 = vadd.f32 %v344_v62, %v293_v35  ;;  %v421_v9 = vmul.f32 %v970_v20, %v948_v11  ;;  %v398_v42 = vmul.f32 0.26726124, %v397_v32  ;;  %v424_v43 = vmul.f32 %v980_v25, %v948_v11 }
  0x88   : > { %v431_v40 = vadd.f32 %v430_v5, %v404_v36  ;;  %v379_v41 = vsub.f32 %v338_v37, %v378_v22  ;;  %v410_v10 = vmul.f32 %v934_v4, %v948_v11  ;;  %v408_v31 = vmul.f32 0.46291006, %v407_v24 }
  0x89   : > { %v382_v44 = vadd.f32 %v381_v27, %v345_v38  ;;  %v422_v46 = vmul.f32 0.5345225, %v421_v9  ;;  %v425_v14 = vmul.f32 0.46291006, %v424_v43 }
  0x8a   : > { %440 = vst [vmem:[%s1055_s19 + $0x30] sm:$0xff] %v431_v40  ;;  %v384_v21 = vadd.f32 %v383_v34, %v379_v41 }
  0x8b   : > { %v406_v45 = vsub.f32 %v382_v44, %v405_v39 }
  0x8c   : > { %v399_v20 = vsub.f32 %v384_v21, %v398_v42 }
  0x8d   : > { %v411_v48 = vadd.f32 %v410_v10, %v406_v45 }
  0x8e   : > { %v409_v50 = vsub.f32 %v399_v20, %v408_v31 }
  0x8f   : > { %v423_v25 = vadd.f32 %v422_v46, %v411_v48 }
  0x90   : > { %v426_v51 = vsub.f32 %v409_v50, %v425_v14 }
  0x91   : > { %442 = vst [vmem:[%s1055_s19 + $0x40] sm:$0xff] %v423_v25 }
  0x92   : > { %441 = vst [vmem:[%s1055_s19 + $0x38] sm:$0xff] %v426_v51 }
  0x93   : > { %690 = shalt.err (!%p687_p1)
}
  0x94   : > { %s691_s24 = scalar_lea.hbm %s1155_s14, 1152  ;;  %s695_s4 = scalar_lea.hbm %s1203_s2, 2304 }
  0x95   : > { %p692_p11 = scmp.ne.s32.totalorder %s1155_s14, %s691_s24  ;;  %p696_p4 = scmp.lt.u32.totalorder %s1155_s14, %s1203_s2 }
  0x96   : > { %p697_p10 = scmp.lt.u32.totalorder %s695_s4, %s691_s24  ;;  %p699_p13 = scmp.lt.u32.totalorder %s691_s24, %s1155_s14 }
  0x97   : > { %p693_p12 = pnand %p692_p11, %p1215_p3 }
  0x98   : > { %p698_p6 = por %p697_p10, %p696_p4 }
  0x99   : > { %p694_p2 = pneg %p693_p12 }
  0x9a   : > { %p700_p5 = por %p699_p13, %p698_p6 }
  0x9c   : > { %p701_p7 = pnand %p700_p5, %p694_p2 }
  0x9e   : > { %704 = shalt.err (!%p701_p7)
}
  0x9f   : > { %570 = dma.vmem_to_hbm [thread:$0]  (%p1215_p3), %s1157_s8, 1152, %s1155_s14, %s444_s23  }
  0xa0 PF: > { %s470_s30 = sand.u32 1, %s735_s9   ;;  %p1216_p8 = scmp.ne.s32.totalorder %s1208_s21, 0 }
  0xa1   : > { %p1217_p9 = scmp.ge.s32.totalorder %s747_s12, 2  ;;  %s471_s28 = scalar_lea.sflag [#allocation4], %s470_s30 }
  0xa3   : > { %p580_p0 = pnand %p1217_p9, %p1216_p8 }
  0xa5   : > { %730 = dma.done.wait (!%p580_p0), %s471_s28, 1152  }
  0xa6   : > { %732 = vsyncadd (!%p580_p0), %s471_s28, 4294966144  ;;  %p18_p1 = scmp.ge.s32.totalorder %s792_s15, 4   ;;  %s1218_s9 = smov %s739_s10 }
  0xa7   : > { %s1219_s10 = smov %s743_s11  ;;  %s1220_s11 = smov %s804_s18 }
  0xa8   : > { %s1221_s12 = smov %s792_s15  ;;  %20 = sbr.rel (!%p18_p1) target bundleno = 7 (0x7), region = 89 }
  0xaf   :  { %476 = vsyncpa [#allocation3], 1 }
  0xb0   :  { %478 = vsyncpa [#allocation3 + $0x1], 1 }
  0xb1   :  { %479 = vsyncpa [#allocation6], 1 }
  0xb2   :  { %481 = vsyncpa [#allocation6 + $0x1], 1 }
  0xb3   :  { %482 = vsyncpa [#allocation4], 1 }
  0xb4   :  { %484 = vsyncpa [#allocation4 + $0x1], 1 }

</bundles_post_ra>
